<compile_context>
chip_gen: v7x
topology: tpu7x:2x2x1
jax: 0.10.0
libtpu: 0.0.40
codegen_flags: <defaults>
</compile_context>

<pallas_src>
from typing import NamedTuple

import jax
import jax.numpy as jnp
from jax.experimental import pallas as pl
from jax.experimental.pallas import tpu as pltpu


# ---------------------------------------------------------------------------
# Kernel
# ---------------------------------------------------------------------------
def _ensemble_kernel(x_ref, w_ref, r_ref, b_ref, o_ref, acc_ref):
    """grid = (K tiles of the flattened feature dim D,), sequential reduction.

    Per step: one MXU matmul streams this K-tile of ALL member weights
    ([B, tk] x [tk, N*C] -> f32 [B, N*C]).  Finalize: member mean via a tiny
    matmul against a constant 1/N selection matrix, plus the mean bias.
    """
    k = pl.program_id(0)
    nk = pl.num_programs(0)

    # Weight stream goes straight through the MXU; the VPU only casts the
    # tiny [B, tk] activation tile (keeps v7x from co-binding on VALU).
    partial = jnp.dot(
        x_ref[...].astype(w_ref.dtype),
        w_ref[...],
        preferred_element_type=jnp.float32,
    )

    # Assign on the first step (saves a zero-init store+load pass).
    @pl.when(k == 0)
    def _():
        acc_ref[...] = partial

    @pl.when(k > 0)
    def _():
        acc_ref[...] += partial

    @pl.when(k == nk - 1)
    def _():
        # Member mean: [B, N*C] @ [N*C, C] with R[n*C + c, c] = 1/N.
        logits = jnp.dot(acc_ref[...], r_ref[...],
                         preferred_element_type=jnp.float32)
        o_ref[...] = (logits + b_ref[...]).astype(o_ref.dtype)


# ---------------------------------------------------------------------------
# One-time parameter preparation (hoisted out of the forward path)
# ---------------------------------------------------------------------------
def _round_up(a, b):
    return ((a + b - 1) // b) * b


def _choose_tk(d, nc, *, weight_bytes=2, budget_bytes=8 << 20):
    """Largest 128-multiple K tile whose double-buffered weight block stays
    within `budget_bytes` (safe on v7x's 64 MiB VMEM; v5e/v6e have more)."""
    nc_lanes = _round_up(nc, 128)                       # VMEM lane padding
    max_tk = budget_bytes // (2 * nc_lanes * weight_bytes)  # 2x: double buffer
    max_tk = max(128, (max_tk // 128) * 128)
    return min(_round_up(d, 128), max_tk)


class EnsembleParams(NamedTuple):
    w_packed: jax.Array   # [D_pad, N*C]   weight_dtype, lane-dense
    b_mean: jax.Array     # [1, C]         f32 mean bias
    r_mean: jax.Array     # [N*C, C]       f32 member-mean reduction matrix
    tk: int               # K tile
    d: int                # original flattened feature dim
    n: int                # number of ensemble members
    c: int                # number of classes


def prepare_ensemble_params(weights, biases, *, weight_dtype=jnp.bfloat16):
    """One-time setup.  weights: [N, D, C], biases: [N, C].

    Use weight_dtype=jnp.float32 for bit-level parity with an f32 ensemble
    (at 2x the HBM weight-stream cost).
    """
    # TODO(synk): for inference with static weights, fold the member mean into
    # a single [D, C] weight here and drop the in-kernel member axis entirely
    # (N-fold reduction in HBM weight traffic per call).
    n, d, c = weights.shape
    tk = _choose_tk(d, n * c, weight_bytes=jnp.dtype(weight_dtype).itemsize)
    d_pad = _round_up(d, tk)

    # [N, D, C] -> [D, N*C]: big D axis tiled, members/classes lane-dense.
    w_packed = jnp.transpose(weights, (1, 0, 2)).reshape(d, n * c)
    w_packed = w_packed.astype(weight_dtype)
    if d_pad != d:
        w_packed = jnp.concatenate(
            [w_packed, jnp.zeros((d_pad - d, n * c), w_packed.dtype)], axis=0)

    b_mean = jnp.mean(biases.astype(jnp.float32), axis=0, keepdims=True)  # [1, C]

    rows = jnp.arange(n * c)[:, None] % c
    cols = jnp.arange(c)[None, :]
    r_mean = (rows == cols).astype(jnp.float32) / n                        # [N*C, C]

    return EnsembleParams(w_packed, b_mean, r_mean, tk, d, n, c)


# ---------------------------------------------------------------------------
# Forward
# ---------------------------------------------------------------------------
def ensemble_forward(x_nchw, params: EnsembleParams):
    """x_nchw: [B, C_in, H, W] float32 -> averaged logits [B, num_classes]."""
    b = x_nchw.shape[0]
    x_flat = x_nchw.reshape(b, -1).astype(jnp.float32)          # [B, D]
    assert x_flat.shape[1] == params.d

    d_pad, nc = params.w_packed.shape
    if d_pad != params.d:
        x_flat = jnp.pad(x_flat, ((0, 0), (0, d_pad - params.d)))

    tk = params.tk
    grid = (d_pad // tk,)

    return pl.pallas_call(
        _ensemble_kernel,
        out_shape=jax.ShapeDtypeStruct((b, params.c), jnp.float32),
        grid_spec=pltpu.PrefetchScalarGridSpec(
            num_scalar_prefetch=0,
            grid=grid,
            in_specs=[
                pl.BlockSpec((b, tk), lambda k: (0, k)),          # x K-tile
                pl.BlockSpec((tk, nc), lambda k: (k, 0)),         # all-member weights
                pl.BlockSpec((nc, params.c), lambda k: (0, 0)),   # member-mean matrix
                pl.BlockSpec((1, params.c), lambda k: (0, 0)),    # mean bias
            ],
            out_specs=pl.BlockSpec((b, params.c), lambda k: (0, 0)),
            scratch_shapes=[pltpu.VMEM((b, nc), jnp.float32)],    # [B, N*C] accumulator
        ),
        compiler_params=pltpu.CompilerParams(
            # Single K axis reduces into VMEM scratch -> sequential.
            # TODO(synk): on v7x, split the K axis across the 2 TensorCores
            # (parallel partial outputs + a trailing combine) to double the
            # aggregate weight-stream bandwidth for large ensembles.
            dimension_semantics=("arbitrary",),
            vmem_limit_bytes=32 << 20,
        ),
    )(x_flat, params.w_packed, params.r_mean, params.b_mean)


# ---------------------------------------------------------------------------
# Self-test
# ---------------------------------------------------------------------------
if __name__ == "__main__":
    B, C_IN, H, W = 2, 4, 16, 16
    NUM_MODELS, NUM_CLASSES = 8, 10
    D = C_IN * H * W

    key = jax.random.PRNGKey(0)
    kx, kw, kb = jax.random.split(key, 3)
    x = jax.random.normal(kx, (B, C_IN, H, W), dtype=jnp.float32)
    weights = jax.random.normal(kw, (NUM_MODELS, D, NUM_CLASSES),
                                dtype=jnp.float32) * 0.02
    biases = jax.random.normal(kb, (NUM_MODELS, NUM_CLASSES),
                               dtype=jnp.float32) * 0.1

    # One-time prep (layout / cast / padding hoisted out of the forward path).
    params = prepare_ensemble_params(weights, biases)

    out = jax.block_until_ready(ensemble_forward(x, params))

    # Pure-JAX reference with the same bf16 rounding of x and W as the kernel.
    x_flat = x.reshape(B, D)
    x_bf = x_flat.astype(jnp.bfloat16).astype(jnp.float32)
    w_bf = weights.astype(jnp.bfloat16).astype(jnp.float32)
    logits = jnp.einsum("bd,ndc->nbc", x_bf, w_bf,
                        precision=jax.lax.Precision.HIGHEST)
    ref = jnp.mean(logits + biases[:, None, :], axis=0)

    assert out.shape == (B, NUM_CLASSES)
    err = float(jnp.max(jnp.abs(out - ref)))
    assert jnp.allclose(out, ref, atol=2e-3, rtol=2e-3), err

    print("KERNEL_OK")
</pallas_src>

<mosaic_0001>
module attributes {stable_mosaic.version = 11 : i64} {
  func.func @_ensemble_kernel(%arg0: i32, %arg1: memref<2x1024xf32, #tpu.memory_space<vmem>>, %arg2: memref<1024x80xbf16, #tpu.memory_space<vmem>>, %arg3: memref<80x10xf32, #tpu.memory_space<vmem>>, %arg4: memref<1x10xf32, #tpu.memory_space<vmem>>, %arg5: memref<2x10xf32, #tpu.memory_space<vmem>>, %arg6: memref<2x80xf32, #tpu.memory_space<vmem>>) attributes {dimension_semantics = [#tpu.dimension_semantics<arbitrary>], iteration_bounds = array<i64: 1>, scalar_prefetch = 0 : i64, scratch_operands = 1 : i64, tpu.core_type = #tpu.core_type<tc>, window_params = [{transform_indices = @transform_0, window_bounds = array<i64: 2, 1024>}, {transform_indices = @transform_1, window_bounds = array<i64: 1024, 80>}, {pipeline_mode = #tpu.pipeline_mode<synchronous>, transform_indices = @transform_2, window_bounds = array<i64: 80, 10>}, {pipeline_mode = #tpu.pipeline_mode<synchronous>, transform_indices = @transform_3, window_bounds = array<i64: 1, 10>}, {pipeline_mode = #tpu.pipeline_mode<synchronous>, transform_indices = @transform_4, window_bounds = array<i64: 2, 10>}]} {
    %c0 = arith.constant 0 : index
    %c0_0 = arith.constant 0 : index
    %0 = vector.load %arg1[%c0, %c0_0] : memref<2x1024xf32, #tpu.memory_space<vmem>>, vector<2x1024xf32>
    %1 = arith.truncf %0 : vector<2x1024xf32> to vector<2x1024xbf16>
    %c0_1 = arith.constant 0 : index
    %c0_2 = arith.constant 0 : index
    %2 = vector.load %arg2[%c0_1, %c0_2] : memref<1024x80xbf16, #tpu.memory_space<vmem>>, vector<1024x80xbf16>
    %cst = arith.constant dense<0.000000e+00> : vector<2x80xf32>
    %3 = tpu.matmul %1, %2, %cst {dimension_numbers = #tpu.dot_dimension_numbers<[1], [0], [0], [1], [0, 0, 1, 1], [], []>} : vector<2x1024xbf16>, vector<1024x80xbf16>, vector<2x80xf32> -> vector<2x80xf32>
    %c0_i32 = arith.constant 0 : i32
    %4 = arith.cmpi eq, %arg0, %c0_i32 : i32
    %5 = arith.extui %4 : i1 to i32
    %c0_i32_3 = arith.constant 0 : i32
    %6 = arith.cmpi ne, %5, %c0_i32_3 : i32
    scf.if %6 {
      %c0_8 = arith.constant 0 : index
      %c0_9 = arith.constant 0 : index
      %13 = vector.load %arg6[%c0_8, %c0_9] : memref<2x80xf32, #tpu.memory_space<vmem>>, vector<2x80xf32>
      tpu.vector_store %arg6[%c0_8, %c0_9], %3 {strides = array<i32>} : memref<2x80xf32, #tpu.memory_space<vmem>>, vector<2x80xf32>,
    } else {
    }
    %c0_i32_4 = arith.constant 0 : i32
    %7 = arith.cmpi sgt, %arg0, %c0_i32_4 : i32
    %8 = arith.extui %7 : i1 to i32
    %c0_i32_5 = arith.constant 0 : i32
    %9 = arith.cmpi ne, %8, %c0_i32_5 : i32
    scf.if %9 {
      %c0_8 = arith.constant 0 : index
      %c0_9 = arith.constant 0 : index
      %13 = vector.load %arg6[%c0_8, %c0_9] : memref<2x80xf32, #tpu.memory_space<vmem>>, vector<2x80xf32>
      %14 = arith.addf %13, %3 : vector<2x80xf32>
      %c0_10 = arith.constant 0 : index
      %c0_11 = arith.constant 0 : index
      %15 = vector.load %arg6[%c0_10, %c0_11] : memref<2x80xf32, #tpu.memory_space<vmem>>, vector<2x80xf32>
      tpu.vector_store %arg6[%c0_10, %c0_11], %14 {strides = array<i32>} : memref<2x80xf32, #tpu.memory_space<vmem>>, vector<2x80xf32>,
    } else {
    }
    %c0_i32_6 = arith.constant 0 : i32
    %10 = arith.cmpi eq, %arg0, %c0_i32_6 : i32
    %11 = arith.extui %10 : i1 to i32
    %c0_i32_7 = arith.constant 0 : i32
    %12 = arith.cmpi ne, %11, %c0_i32_7 : i32
    scf.if %12 {
      %c0_8 = arith.constant 0 : index
      %c0_9 = arith.constant 0 : index
      %13 = vector.load %arg6[%c0_8, %c0_9] : memref<2x80xf32, #tpu.memory_space<vmem>>, vector<2x80xf32>
      %c0_10 = arith.constant 0 : index
      %c0_11 = arith.constant 0 : index
      %14 = vector.load %arg3[%c0_10, %c0_11] : memref<80x10xf32, #tpu.memory_space<vmem>>, vector<80x10xf32>
      %cst_12 = arith.constant dense<0.000000e+00> : vector<2x10xf32>
      %15 = tpu.matmul %13, %14, %cst_12 {dimension_numbers = #tpu.dot_dimension_numbers<[1], [0], [0], [1], [0, 0, 1, 1], [], []>} : vector<2x80xf32>, vector<80x10xf32>, vector<2x10xf32> -> vector<2x10xf32>
      %c0_13 = arith.constant 0 : index
      %c0_14 = arith.constant 0 : index
      %16 = vector.load %arg4[%c0_13, %c0_14] : memref<1x10xf32, #tpu.memory_space<vmem>>, vector<1x10xf32>
      %17 = vector.broadcast %16 : vector<1x10xf32> to vector<2x10xf32>
      %18 = arith.addf %15, %17 : vector<2x10xf32>
      %c0_15 = arith.constant 0 : index
      %c0_16 = arith.constant 0 : index
      %19 = vector.load %arg5[%c0_15, %c0_16] : memref<2x10xf32, #tpu.memory_space<vmem>>, vector<2x10xf32>
      tpu.vector_store %arg5[%c0_15, %c0_16], %18 {strides = array<i32>} : memref<2x10xf32, #tpu.memory_space<vmem>>, vector<2x10xf32>,
    } else {
    }
    return
  }
  func.func @transform_0(%arg0: i32) -> (i32, i32) {
    %c0_i32 = arith.constant 0 : i32
    %c0_i32_0 = arith.constant 0 : i32
    return %c0_i32, %arg0 : i32, i32
  }
  func.func @transform_1(%arg0: i32) -> (i32, i32) {
    %c0_i32 = arith.constant 0 : i32
    %c0_i32_0 = arith.constant 0 : i32
    return %arg0, %c0_i32 : i32, i32
  }
  func.func @transform_2(%arg0: i32) -> (i32, i32) {
    %c0_i32 = arith.constant 0 : i32
    %c0_i32_0 = arith.constant 0 : i32
    %c0_i32_1 = arith.constant 0 : i32
    return %c0_i32, %c0_i32_0 : i32, i32
  }
  func.func @transform_3(%arg0: i32) -> (i32, i32) {
    %c0_i32 = arith.constant 0 : i32
    %c0_i32_0 = arith.constant 0 : i32
    %c0_i32_1 = arith.constant 0 : i32
    return %c0_i32, %c0_i32_0 : i32, i32
  }
  func.func @transform_4(%arg0: i32) -> (i32, i32) {
    %c0_i32 = arith.constant 0 : i32
    %c0_i32_0 = arith.constant 0 : i32
    %c0_i32_1 = arith.constant 0 : i32
    return %c0_i32, %c0_i32_0 : i32, i32
  }
}

</mosaic_0001>

<bundles_post_ra>
// kernel: tpu_custom_call.1
= control target key start
LH: loop header
LB: loop body
LE: loop exit
PB: predicated region body
PF: predicated region fallthrough
CT: control target
= control target key end

     0   :  { %v27_v28 = vlaneseq  ;;  %v1168_v36 = vmov 1983009808   ;;  %s1447_s0 = inlined_call_operand.vmem [shape: f32[2,1024], index: 0, kind: input, shape index: {}]   ;;  %s1448_s1 = inlined_call_operand.vmem [shape: bf16[1024,80], index: 1, kind: input, shape index: {}]   ;;  %s1449_s2 = inlined_call_operand.vmem [shape: f32[80,10], index: 2, kind: input, shape index: {}]   ;;  %s1450_s3 = inlined_call_operand.vmem [shape: f32[1,10], index: 3, kind: input, shape index: {}]   ;;  %s1451_s4 = inlined_call_operand.hbm [shape: f32[2,10], index: 4, kind: output, shape index: {}]  }
   0x1   :  { %v1078_v0 = vld [vmem:[%s1448_s1 + $0x40] sm:$0xff]   ;;  %v1082_v4 = vld [vmem:[%s1448_s1 + $0x48] sm:$0xff]   ;;  %v1086_v8 = vld [vmem:[%s1448_s1 + $0x50] sm:$0xff]   ;;  %v25_v37 = vunpack.c.l.s4 %v1168_v36 }
   0x2   :  { %v1079_v1 = vld [vmem:[%s1448_s1 + $0xc0] sm:$0xff]   ;;  %936 = vmatprep.subr.bf16.mxu0 %v1078_v0  ;;  %v1083_v5 = vld [vmem:[%s1448_s1 + $0xc8] sm:$0xff]   ;;  %v1087_v9 = vld [vmem:[%s1448_s1 + $0xd0] sm:$0xff]   ;;  %v28_v33 = vshrl.u32 %v27_v28, 7 }
   0x3   :  { %v1080_v2 = vld [vmem:[%s1448_s1] sm:$0xff]   ;;  %958 = vmatprep.subr.bf16.mxu1 %v1079_v1  ;;  %v1084_v6 = vld [vmem:[%s1448_s1 + $0x8] sm:$0xff]   ;;  %v1088_v10 = vld [vmem:[%s1448_s1 + $0x10] sm:$0xff]   ;;  %v26_v39 = vunpack.c.0.s8 %v25_v37 }
   0x4   :  { %v1081_v3 = vld [vmem:[%s1448_s1 + $0x80] sm:$0xff]   ;;  %937 = vmatpush3.bf16.msra.mxu0 %v1080_v2  ;;  %v1085_v7 = vld [vmem:[%s1448_s1 + $0x88] sm:$0xff]   ;;  %v1089_v11 = vld [vmem:[%s1448_s1 + $0x90] sm:$0xff]  }
   0x5   :  { %959 = vmatpush3.bf16.msra.mxu1 %v1081_v3  ;;  %938 = vmatprep.subr.bf16.mxu0 %v1082_v4  ;;  %v1090_v12 = vld [vmem:[%s1448_s1 + $0x58] sm:$0xff]   ;;  %v1094_v16 = vld [vmem:[%s1448_s1 + $0x60] sm:$0xff]   ;;  %v1098_v20 = vld [vmem:[%s1448_s1 + $0x68] sm:$0xff]   ;;  %v1303_v41 = vsub.s32 %v26_v39, %v28_v33 }
   0x6   :  { %960 = vmatprep.subr.bf16.mxu1 %v1083_v5  ;;  %v1091_v13 = vld [vmem:[%s1448_s1 + $0xd8] sm:$0xff]   ;;  %v1095_v17 = vld [vmem:[%s1448_s1 + $0xe0] sm:$0xff]   ;;  %v1099_v21 = vld [vmem:[%s1448_s1 + $0xe8] sm:$0xff]  }
   0x7   :  { %v1092_v14 = vld [vmem:[%s1448_s1 + $0x18] sm:$0xff]   ;;  %v1096_v18 = vld [vmem:[%s1448_s1 + $0x20] sm:$0xff]   ;;  %v1100_v22 = vld [vmem:[%s1448_s1 + $0x28] sm:$0xff]  }
   0x8   :  { %939 = vmatpush3.bf16.msra.mxu0 %v1084_v6  ;;  %v1093_v15 = vld [vmem:[%s1448_s1 + $0x98] sm:$0xff]   ;;  %v1097_v19 = vld [vmem:[%s1448_s1 + $0xa0] sm:$0xff]   ;;  %v1101_v23 = vld [vmem:[%s1448_s1 + $0xa8] sm:$0xff]  }
   0x9   :  { %961 = vmatpush3.bf16.msra.mxu1 %v1085_v7  ;;  %940 = vmatprep.subr.bf16.mxu0 %v1086_v8  ;;  %v1102_v24 = vld [vmem:[%s1448_s1 + $0x70] sm:$0xff]   ;;  %v1106_v29 = vld [vmem:[%s1448_s1 + $0x78] sm:$0xff]   ;;  %v19_v34 = vld [vmem:[%s1447_s0] sm:$0xff] }
   0xa   :  { %962 = vmatprep.subr.bf16.mxu1 %v1087_v9  ;;  %v1103_v25 = vld [vmem:[%s1448_s1 + $0xf0] sm:$0xff]   ;;  %v1107_v30 = vld [vmem:[%s1448_s1 + $0xf8] sm:$0xff]   ;;  %v1111_v35 = vld [vmem:[%s1448_s1 + $0x140] sm:$0xff]   ;;  %v23_v40 = vcombine.high %v19_v34, %v19_v34  ;;  %v30_v42 = vrot.slane %v19_v34, %v1303_v41 }
   0xb   :  { %v1104_v26 = vld [vmem:[%s1448_s1 + $0x30] sm:$0xff]   ;;  %v1108_v31 = vld [vmem:[%s1448_s1 + $0x38] sm:$0xff]   ;;  %v1112_v38 = vld [vmem:[%s1448_s1 + $0x1c0] sm:$0xff]  }
   0xc   :  { %941 = vmatpush3.bf16.msra.mxu0 %v1088_v10  ;;  %v1105_v27 = vld [vmem:[%s1448_s1 + $0xb0] sm:$0xff]   ;;  %v1109_v32 = vld [vmem:[%s1448_s1 + $0xb8] sm:$0xff]   ;;  %v37_v43 = vrot.slane %v23_v40, %v1303_v41  ;;  %v38_v44 = vcombine.high %v30_v42, %v30_v42  ;;  %v1113_v46 = vld [vmem:[%s1448_s1 + $0x100] sm:$0xff]   ;;  %v65_v47 = vpack.c.bf16 %v30_v42, %v30_v42 }
   0xd   :  { %963 = vmatpush3.bf16.msra.mxu1 %v1089_v11  ;;  %942 = vmatprep.subr.bf16.mxu0 %v1090_v12  ;;  %v1114_v49 = vld [vmem:[%s1448_s1 + $0x180] sm:$0xff]   ;;  %v1115_v52 = vld [vmem:[%s1448_s1 + $0x148] sm:$0xff]   ;;  %v1119_v56 = vld [vmem:[%s1448_s1 + $0x150] sm:$0xff]  }
   0xe   :  { %964 = vmatprep.subr.bf16.mxu1 %v1091_v13  ;;  %v39_v45 = vcombine.high %v37_v43, %v37_v43  ;;  %v67_v48 = vpack.c.bf16 %v37_v43, %v37_v43  ;;  %v66_v50 = vpack.c.bf16 %v38_v44, %v38_v44  ;;  %v1116_v53 = vld [vmem:[%s1448_s1 + $0x1c8] sm:$0xff]   ;;  %v1120_v57 = vld [vmem:[%s1448_s1 + $0x1d0] sm:$0xff]   ;;  %v1123_v60 = vld [vmem:[%s1448_s1 + $0x158] sm:$0xff]  }
   0xf   :  { %v1117_v54 = vld [vmem:[%s1448_s1 + $0x108] sm:$0xff]   ;;  %v1121_v58 = vld [vmem:[%s1448_s1 + $0x110] sm:$0xff]   ;;  %v1124_v61 = vld [vmem:[%s1448_s1 + $0x1d8] sm:$0xff]  }
  0x10   :  { %943 = vmatpush3.bf16.msra.mxu0 %v1092_v14  ;;  %v68_v51 = vpack.c.bf16 %v39_v45, %v39_v45  ;;  %617 = vmatprep.mubr.bf16.mxu0 %v66_v50  ;;  %v1118_v55 = vld [vmem:[%s1448_s1 + $0x188] sm:$0xff]   ;;  %v1122_v59 = vld [vmem:[%s1448_s1 + $0x190] sm:$0xff]   ;;  %v1125_v62 = vld [vmem:[%s1448_s1 + $0x118] sm:$0xff]  }
  0x11   :  { %965 = vmatpush3.bf16.msra.mxu1 %v1093_v15  ;;  %944 = vmatprep.subr.bf16.mxu0 %v1094_v16  ;;  %v1126_v63 = vld [vmem:[%s1448_s1 + $0x198] sm:$0xff]   ;;  %v1127_v0 = vld [vmem:[%s1448_s1 + $0x160] sm:$0xff]   ;;  %v1131_v4 = vld [vmem:[%s1448_s1 + $0x168] sm:$0xff]  }
  0x12   :  { %966 = vmatprep.subr.bf16.mxu1 %v1095_v17  ;;  %657 = vmatprep.mubr.bf16.mxu1 %v68_v51  ;;  %v1128_v1 = vld [vmem:[%s1448_s1 + $0x1e0] sm:$0xff]   ;;  %v1132_v5 = vld [vmem:[%s1448_s1 + $0x1e8] sm:$0xff]   ;;  %v1135_v8 = vld [vmem:[%s1448_s1 + $0x170] sm:$0xff]  }
  0x13   :  { %v1129_v2 = vld [vmem:[%s1448_s1 + $0x120] sm:$0xff]   ;;  %v1133_v6 = vld [vmem:[%s1448_s1 + $0x128] sm:$0xff]   ;;  %v1136_v9 = vld [vmem:[%s1448_s1 + $0x1f0] sm:$0xff]  }
  0x14   :  { %945 = vmatpush3.bf16.msra.mxu0 %v1096_v18  ;;  %v1130_v3 = vld [vmem:[%s1448_s1 + $0x1a0] sm:$0xff]   ;;  %v1134_v7 = vld [vmem:[%s1448_s1 + $0x1a8] sm:$0xff]  }
  0x15   :  { %967 = vmatpush3.bf16.msra.mxu1 %v1097_v19  ;;  %946 = vmatprep.subr.bf16.mxu0 %v1098_v20  ;;  %v20_v10 = vld [vmem:[%s1447_s0 + $0x8] sm:$0xff] }
  0x16   :  { %968 = vmatprep.subr.bf16.mxu1 %v1099_v21 }
  0x18   :  { %947 = vmatpush3.bf16.msra.mxu0 %v1100_v22 }
  0x19   :  { %969 = vmatpush3.bf16.msra.mxu1 %v1101_v23  ;;  %948 = vmatprep.subr.bf16.mxu0 %v1102_v24 }
  0x1a   :  { %970 = vmatprep.subr.bf16.mxu1 %v1103_v25 }
  0x1c   :  { %949 = vmatpush3.bf16.msra.mxu0 %v1104_v26 }
  0x1d   :  { %971 = vmatpush3.bf16.msra.mxu1 %v1105_v27  ;;  %950 = vmatprep.subr.bf16.mxu0 %v1106_v29 }
  0x1e   :  { %972 = vmatprep.subr.bf16.mxu1 %v1107_v30 }
  0x20   :  { %951 = vmatpush3.bf16.msra.mxu0 %v1108_v31 }
  0x21   :  { %973 = vmatpush3.bf16.msra.mxu1 %v1109_v32  ;;  %980 = vmatprep.subr.bf16.mxu0 %v1111_v35 }
  0x22   :  { %1002 = vmatprep.subr.bf16.mxu1 %v1112_v38 }
  0x23   :  { %618 = vmatmul.mubr.bf16.vlgmr.msra.gmra.mrb[0].mxu0 %v65_v47 }
  0x24   :  { %658 = vmatmul.mubr.bf16.vlgmr.msra.gmra.mrb[0].mxu1 %v67_v48  ;;  %981 = vmatpush3.bf16.msra.mxu0 %v1113_v46 }
  0x25   :  { %1003 = vmatpush3.bf16.msra.mxu1 %v1114_v49  ;;  %982 = vmatprep.subr.bf16.mxu0 %v1115_v52 }
  0x26   :  { %1004 = vmatprep.subr.bf16.mxu1 %v1116_v53 }
  0x28   :  { %983 = vmatpush3.bf16.msra.mxu0 %v1117_v54 }
  0x29   :  { %1005 = vmatpush3.bf16.msra.mxu1 %v1118_v55  ;;  %984 = vmatprep.subr.bf16.mxu0 %v1119_v56 }
  0x2a   :  { %1006 = vmatprep.subr.bf16.mxu1 %v1120_v57 }
  0x2c   :  { %985 = vmatpush3.bf16.msra.mxu0 %v1121_v58 }
  0x2d   :  { %1007 = vmatpush3.bf16.msra.mxu1 %v1122_v59  ;;  %986 = vmatprep.subr.bf16.mxu0 %v1123_v60 }
  0x2e   :  { %1008 = vmatprep.subr.bf16.mxu1 %v1124_v61 }
  0x30   :  { %987 = vmatpush3.bf16.msra.mxu0 %v1125_v62 }
  0x31   :  { %1009 = vmatpush3.bf16.msra.mxu1 %v1126_v63  ;;  %988 = vmatprep.subr.bf16.mxu0 %v1127_v0 }
  0x32   :  { %1010 = vmatprep.subr.bf16.mxu1 %v1128_v1 }
  0x34   :  { %989 = vmatpush3.bf16.msra.mxu0 %v1129_v2 }
  0x35   :  { %1011 = vmatpush3.bf16.msra.mxu1 %v1130_v3  ;;  %990 = vmatprep.subr.bf16.mxu0 %v1131_v4 }
  0x36   :  { %1012 = vmatprep.subr.bf16.mxu1 %v1132_v5 }
  0x37   :  { %9 = vsyncpa [#allocation4], 0  ;;  %v47_v11 = vrot.slane %v20_v10, %v1303_v41  ;;  %v40_v12 = vcombine.high %v20_v10, %v20_v10  ;;  %v1137_v13 = vld [vmem:[%s1448_s1 + $0x130] sm:$0xff]   ;;  %v1139_v17 = vld [vmem:[%s1448_s1 + $0x178] sm:$0xff]   ;;  %v1169_v28 = vmov 0.0|0.0   ;;  %vm1170_vm0 = vmmov 0  }
  0x38   :  { %991 = vmatpush3.bf16.msra.mxu0 %v1133_v6  ;;  %v1138_v14 = vld [vmem:[%s1448_s1 + $0x1b0] sm:$0xff]   ;;  %v1140_v18 = vld [vmem:[%s1448_s1 + $0x1f8] sm:$0xff]   ;;  %v763_v26 = vld [vmem:[%s1449_s2] sm:$0xff]  ;;  %v1171_v42 = vmov 0.0   ;;  %vm749_vm1 = vcmask 648192   ;;  %vm780_vm2 = vcmask 654336  }
  0x39   :  { %1013 = vmatpush3.bf16.msra.mxu1 %v1134_v7  ;;  %v55_v15 = vcombine.high %v47_v11, %v47_v11  ;;  %v54_v16 = vrot.slane %v40_v12, %v1303_v41  ;;  %992 = vmatprep.subr.bf16.mxu0 %v1135_v8  ;;  %v1141_v21 = vld [vmem:[%s1448_s1 + $0x138] sm:$0xff]   ;;  %v69_v24 = vpack.c.bf16 %v47_v11, %v47_v11  ;;  %v764_v27 = vld [vmem:[%s1449_s2 + $0x8] sm:$0xff]  ;;  %v765_v30 = vld [vmem:[%s1449_s2 + $0x10] sm:$0xff]  ;;  %s1172_s9 = smov [#allocation3]   ;;  %vm854_vm3 = vcmask 74752  }
  0x3a   :  { %1014 = vmatprep.subr.bf16.mxu1 %v1136_v9  ;;  %v1142_v22 = vld [vmem:[%s1448_s1 + $0x1b8] sm:$0xff]   ;;  %v1059_v29 = vpack.c.bf16 %v764_v27, %v763_v26  ;;  %v767_v33 = vld [vmem:[%s1449_s2 + $0x20] sm:$0xff]  ;;  %v768_v34 = vld [vmem:[%s1449_s2 + $0x28] sm:$0xff]  ;;  %s862_s10 = sshll.u32 %s1172_s9, 4  ;;  %s863_s10 = int_to_ptr.vmem [resolvable:$true] %s862_s10 }
  0x3b   :  { %v70_v19 = vpack.c.bf16 %v55_v15, %v55_v15  ;;  %v56_v20 = vcombine.high %v54_v16, %v54_v16  ;;  %v71_v25 = vpack.c.bf16 %v54_v16, %v54_v16  ;;  %v766_v31 = vld [vmem:[%s1449_s2 + $0x18] sm:$0xff]  ;;  %v1065_v35 = vpack.c.bf16 %v768_v34, %v767_v33  ;;  %v769_v36 = vld [vmem:[%s1449_s2 + $0x30] sm:$0xff]  ;;  %v771_v39 = vld [vmem:[%s1449_s2 + $0x40] sm:$0xff]  ;;  %s1144_s11 = scalar_lea.vmem %s863_s10, 32  ;;  %p1149_p1 = scmp.lt.s32.totalorder %s863_s10, %s863_s10 }
  0x3c   :  { %993 = vmatpush3.bf16.msra.mxu0 %v1137_v13  ;;  %v1062_v32 = vpack.c.bf16 %v766_v31, %v765_v30  ;;  %v770_v37 = vld [vmem:[%s1449_s2 + $0x38] sm:$0xff]  ;;  %v772_v40 = vld [vmem:[%s1449_s2 + $0x48] sm:$0xff]  ;;  %v934_v3 = vld [vmem:[%s1450_s3] ss:$0 sm:$0xff]  ;;  %p1145_p0 = scmp.ne.s32.totalorder %s863_s10, %s1144_s11  ;;  %p1150_p2 = scmp.lt.s32.totalorder %s1144_s11, %s1144_s11 }
  0x3d   :  { %1015 = vmatpush3.bf16.msra.mxu1 %v1138_v14  ;;  %v72_v23 = vpack.c.bf16 %v56_v20, %v56_v20  ;;  %994 = vmatprep.subr.bf16.mxu0 %v1139_v17  ;;  %v1068_v38 = vpack.c.bf16 %v770_v37, %v769_v36  ;;  %v1071_v41 = vpack.c.bf16 %v772_v40, %v771_v39 }
  0x3e   :  { %1016 = vmatprep.subr.bf16.mxu1 %v1140_v18  ;;  %697 = vmatprep.mubr.bf16.mxu0 %v70_v19  ;;  %p1151_p3 = por %p1150_p2, %p1149_p1 }
  0x3f   :  { %737 = vmatprep.mubr.bf16.mxu1 %v72_v23 }
  0x40   :  { %995 = vmatpush3.bf16.msra.mxu0 %v1141_v21  ;;  %p1152_p4 = pnand %p1151_p3, %p1145_p0 }
  0x41   :  { %1017 = vmatpush3.bf16.msra.mxu1 %v1142_v22  ;;  %1058 = vmatprep.subr.bf16.mxu0 %v1169_v28 }
  0x43   :  { %698 = vmatmul.mubr.bf16.vlgmr.msra.gmra.mrb[4].mxu0 %v69_v24 }
  0x44   :  { %738 = vmatmul.mubr.bf16.vlgmr.msra.gmra.mrb[4].mxu1 %v71_v25  ;;  %1060 = vmatpush3.bf16.msra.mxu0 %v1059_v29 }
  0x45   :  { %1061 = vmatprep.subr.bf16.mxu0 %v1169_v28  ;;  %1055 = vmatprep.mubr.msk.f32.mxu0 %vm1170_vm0, %v1171_v42 }
  0x48   :  { %1063 = vmatpush3.bf16.msra.mxu0 %v1062_v32 }
  0x49   :  { %1064 = vmatprep.subr.bf16.mxu0 %v1169_v28 }
  0x4c   :  { %1066 = vmatpush3.bf16.msra.mxu0 %v1065_v35 }
  0x4d   :  { %1067 = vmatprep.subr.bf16.mxu0 %v1169_v28 }
  0x50   :  { %1069 = vmatpush3.bf16.msra.mxu0 %v1068_v38 }
  0x51   :  { %1070 = vmatprep.subr.bf16.mxu0 %v1169_v28 }
  0x54   :  { %1072 = vmatpush3.bf16.msra.mxu0 %v1071_v41 }
  0xf6   :  { %v952_v43 = vpop.f32.mrb[0].mxu0 }
  0xf7   :  { %v974_v44 = vpop.f32.mrb[0].mxu1  ;;  %v953_v45 = vpop.f32.mrb[1].mxu0 }
  0xf8   :  { %v975_v46 = vpop.f32.mrb[1].mxu1  ;;  %v954_v47 = vadd.f32 %v953_v45, %v952_v43  ;;  %v955_v49 = vpop.f32.mrb[2].mxu0 }
  0xf9   :  { %v976_v48 = vadd.f32 %v975_v46, %v974_v44  ;;  %v977_v50 = vpop.f32.mrb[2].mxu1  ;;  %v956_v51 = vpop.f32.mrb[3].mxu0 }
  0xfa   :  { %v978_v52 = vpop.f32.mrb[3].mxu1 }
  0xfb   :  { %v660_v53 = vadd.f32 %v976_v48, %v954_v47 }
 0x116   :  { %v996_v54 = vpop.f32.mrb[4].mxu0 }
 0x117   :  { %v1018_v55 = vpop.f32.mrb[4].mxu1  ;;  %v997_v56 = vpop.f32.mrb[5].mxu0 }
 0x118   :  { %v1019_v57 = vpop.f32.mrb[5].mxu1  ;;  %v998_v58 = vadd.f32 %v997_v56, %v996_v54  ;;  %v999_v60 = vpop.f32.mrb[6].mxu0 }
 0x119   :  { %v1020_v59 = vadd.f32 %v1019_v57, %v1018_v55  ;;  %v1021_v61 = vpop.f32.mrb[6].mxu1  ;;  %v1000_v62 = vpop.f32.mrb[7].mxu0 }
 0x11a   :  { %v1022_v63 = vpop.f32.mrb[7].mxu1  ;;  %v700_v0 = vadd.f32 %v998_v58, %v660_v53 }
 0x11c   :  { %v740_v1 = vadd.f32 %v1020_v59, %v700_v0 }
 0x11e   :  { %750 = vst.msk [vmem:[#allocation2] sm:$0x3] %vm749_vm1, %v740_v1 }
 0x125   :  { %v762_v2 = vld [vmem:[#allocation2] sm:$0x3] }
 0x126   :  { %1056 = vmatmul.mubr.msk.f32.vlgmr.msra.gmra.mrb[8].mxu0 %vm780_vm2, %v762_v2 }
 0x1f9   :  { %v850_v4 = vpop.f32.mrb[8].mxu0 }
 0x1fa   :  { %v851_v5 = vadd.f32 %v934_v3, %v850_v4  ;;  %v1057_v6 = vpop.f32.mrb[9].mxu0 }
 0x1fc   :  { %855 = vst.msk [vmem:[#allocation3] sm:$0x3] %vm854_vm3, %v851_v5 }
 0x1fd   :  { %1155 = shalt.err (!%p1152_p4)
}
 0x1fe   :  { %s1156_s14 = scalar_lea.hbm %s1451_s4, 32 }
 0x1ff   :  { %p1157_p5 = scmp.ne.s32.totalorder %s1451_s4, %s1156_s14  ;;  %p1160_p6 = scmp.lt.u32.totalorder %s1156_s14, %s1451_s4 }
 0x201   :  { %p1162_p7 = pnand %p1160_p6, %p1157_p5 }
 0x203   :  { %1165 = shalt.err (!%p1162_p7)
}
 0x204   :  { %865 = dma.vmem_to_hbm [thread:$0]  %s863_s10, 32, %s1451_s4, [#allocation4]  }
 0x205   :  { %1166 = dma.done.wait [#allocation4], 32  }
 0x206   :  { %1167 = vsyncadd [#allocation4], 4294967264 }
 0x207   :  { %869 = vsyncpa [#allocation4], 1 }

</bundles_post_ra>
